<compile_context>
chip_gen: v7x
topology: tpu7x:2x2x1
jax: 0.10.0
libtpu: 0.0.40
codegen_flags: <defaults>
</compile_context>

<pallas_src>
from functools import partial

import numpy as np
import jax
import jax.numpy as jnp
from jax.experimental import pallas as pl
from jax.experimental.pallas import tpu as pltpu

# I-BERT int-softmax constants (mirror the PyTorch module).
_X0 = -0.6931                        # -ln(2)
_N_EXP = 30                          # self.n
_COEF0 = 0.35815147
_COEF1 = 0.96963238 / 0.35815147
_COEF2 = 1.0 / 0.35815147
_EPS = float(np.finfo(np.float32).eps)
_QMAX16 = float(2 ** 15 - 1)         # QuantAct(16) quant_max


def _int_softmax_ibert_kernel(sf_ref, x_ref, o_ref, *, output_bit):
    """One (tm, N) row tile of the I-BERT integer softmax."""
    sf = sf_ref[0]                                       # input scaling factor (f32, SMEM)

    # ---- scalar precomputation (cheap, once per tile) ----------------------
    x0_int = jnp.floor(jnp.float32(_X0) / sf)            # negative
    b_int = jnp.floor(jnp.float32(_COEF1) / sf)
    c_int = jnp.floor(jnp.float32(_COEF2) / (sf * sf))
    exp_scale = (jnp.float32(_COEF0) * (sf * sf)) / jnp.float32(2.0 ** _N_EXP)

    # QuantAct(16) dynamic range: exp_int >= 0 and its global max is exactly
    # c_int * 2^n (attained at every row's max element, where r == 0, q == 0),
    # so the module's data-dependent global min/max reduction collapses to this
    # analytic scalar and the kernel stays a single streaming pass.
    max_abs = jnp.maximum(c_int * jnp.float32(2.0 ** _N_EXP), jnp.float32(_EPS))
    q_scale = max_abs / jnp.float32(_QMAX16)
    new_scale = q_scale / exp_scale

    # ---- x_int = trunc(x / sf); subtract row max (exact in f32) ------------
    x = x_ref[...].astype(jnp.float32)                   # (tm, N)
    x_int = jnp.trunc(x / sf)                            # == (x / sf).to(int32)
    x_int = x_int - jnp.max(x_int, axis=-1, keepdims=True)

    # ---- int_exp ------------------------------------------------------------
    x_int = jnp.maximum(x_int, jnp.float32(_N_EXP) * x0_int)
    q = jnp.floor(x_int / x0_int)                        # in [0, n]
    r = x_int - x0_int * q
    # int_polynomial(r): z = r * (r + b_int) + c_int
    z = r * (r + b_int) + c_int
    exp_int = jnp.maximum(jnp.floor(z * jnp.exp2(jnp.float32(_N_EXP) - q)), 0.0)

    # ---- QuantAct(16) fake-quant of exp_int ---------------------------------
    x_scaled = exp_int / exp_scale
    x_quant = jnp.round(x_scaled / new_scale)
    x_quant = jnp.minimum(jnp.maximum(x_quant, -jnp.float32(_QMAX16)),
                          jnp.float32(_QMAX16))
    exp_int = (x_quant * q_scale) / q_scale              # dequant, back to "int"

    # ---- normalization ------------------------------------------------------
    exp_sum = jnp.sum(exp_int, axis=-1, keepdims=True)
    factor = jnp.floor(jnp.float32(2.0 ** 32) / exp_sum)
    shift = jnp.float32(2.0 ** -(32 - output_bit + 1))   # exact power-of-two mul
    out = jnp.floor(exp_int * factor * shift)
    out_scale = jnp.float32(2.0 / 2 ** output_bit)
    o_ref[...] = (out * out_scale).astype(o_ref.dtype)


def _round_up(v, m):
    return ((v + m - 1) // m) * m


def int_softmax_ibert(x, scaling_factor, *, output_bit=8, tm=None,
                      out_dtype=jnp.float32):
    """Pallas TPU implementation of IntSoftmax_IBERT.forward.

    Returns (out, out_scaling_factor) matching the PyTorch module.
    """
    orig_shape = x.shape
    N = int(orig_shape[-1])
    rows = int(np.prod(orig_shape[:-1])) if len(orig_shape) > 1 else 1
    x2 = x.reshape(rows, N)                 # keep native dtype; upcast in-kernel
    sf = jnp.asarray(scaling_factor, jnp.float32).reshape(1)

    in_bytes = jnp.dtype(x2.dtype).itemsize
    out_bytes = jnp.dtype(out_dtype).itemsize

    if tm is None:
        # Largest row tile whose double-buffered in+out working set stays under
        # ~40 MiB (safe headroom on v7x's 64 MiB VMEM; plenty on v5e/v6e).
        budget = 40 * 2 ** 20
        per_row = 2 * N * (in_bytes + out_bytes)
        tm = max(8, min(1024, budget // max(per_row, 1)))
    tm = int(max(8, (min(int(tm), _round_up(rows, 8)) // 8) * 8))
    # Keep >= 2 grid steps when possible so v7x's two TensorCores both get work.
    if rows >= 16 and pl.cdiv(rows, tm) < 2:
        tm = max(8, _round_up(pl.cdiv(rows, 2), 8))

    grid = (pl.cdiv(rows, tm),)             # tail block masked by Pallas

    need = 2 * tm * N * (in_bytes + out_bytes)   # double-buffered in + out
    vmem_limit = int(min(60 * 2 ** 20, max(32 * 2 ** 20, 2 * need)))

    kernel = partial(_int_softmax_ibert_kernel, output_bit=output_bit)

    out = pl.pallas_call(
        kernel,
        out_shape=jax.ShapeDtypeStruct((rows, N), out_dtype),
        grid_spec=pltpu.PrefetchScalarGridSpec(
            num_scalar_prefetch=1,                        # scaling_factor -> SMEM
            grid=grid,
            # NOTE: for N < 128 (demo uses N=16) the lane dim is under-occupied.
            # TODO(synk): pack 128//N softmax segments per lane row with
            # segmented max/sum for full lane occupancy on small N.
            in_specs=[pl.BlockSpec((tm, N), lambda i, sf_ref: (i, 0))],
            out_specs=pl.BlockSpec((tm, N), lambda i, sf_ref: (i, 0)),
        ),
        compiler_params=pltpu.CompilerParams(
            dimension_semantics=("parallel",),
            vmem_limit_bytes=vmem_limit),
    )(sf, x2)

    out_scale = jnp.float32(2.0 / 2 ** output_bit)
    return out.reshape(orig_shape), out_scale


def _reference_jax(x, scaling_factor, output_bit=8):
    """Pure-JAX reference mirroring the PyTorch IntSoftmax_IBERT.forward."""
    sf = jnp.float32(scaling_factor)
    xf = x.astype(jnp.float32)
    x_int = (xf / sf).astype(jnp.int32)
    x_int = x_int - jnp.max(x_int, axis=-1, keepdims=True)
    # int_exp
    x0_int = jnp.floor(jnp.float32(_X0) / sf)
    xi = jnp.maximum(x_int.astype(jnp.float32), jnp.float32(_N_EXP) * x0_int)
    q = jnp.floor(xi / x0_int)
    r = xi - x0_int * q
    # int_polynomial
    b_int = jnp.floor(jnp.float32(_COEF1) / sf)
    c_int = jnp.floor(jnp.float32(_COEF2) / (sf * sf))
    z = r * (r + b_int) + c_int
    exp_scale = jnp.float32(_COEF0) * (sf * sf)
    exp_int = jnp.maximum(jnp.floor(z * jnp.exp2(jnp.float32(_N_EXP) - q)), 0.0)
    exp_scale = exp_scale / jnp.float32(2.0 ** _N_EXP)
    # QuantAct(16) with the module's global min/max reduction
    x_min = jnp.min(exp_int)
    x_max = jnp.max(exp_int)
    max_abs = jnp.maximum(jnp.maximum(jnp.abs(x_min), jnp.abs(x_max)),
                          jnp.float32(_EPS))
    q_scale = max_abs / jnp.float32(_QMAX16)
    x_scaled = exp_int / exp_scale
    new_scale = q_scale / exp_scale
    x_quant = jnp.round(x_scaled / new_scale)
    x_quant = jnp.minimum(jnp.maximum(x_quant, -jnp.float32(_QMAX16)),
                          jnp.float32(_QMAX16))
    exp_int = (x_quant * q_scale) / q_scale
    # normalization
    exp_sum = jnp.sum(exp_int, axis=-1, keepdims=True)
    factor = jnp.floor(jnp.float32(2.0 ** 32) / exp_sum)
    exp_int = jnp.floor(exp_int * factor / jnp.float32(2.0 ** (32 - output_bit + 1)))
    out_scale = jnp.float32(2.0 / 2 ** output_bit)
    return exp_int * out_scale, out_scale


if __name__ == "__main__":
    key = jax.random.PRNGKey(0)
    # "attention-logit"-like input: [batch, heads, seq, seq]
    B, H, S = 2, 4, 16
    x = jax.random.normal(key, (B, H, S, S), dtype=jnp.float32) * 4.0
    scaling_factor = jnp.float32(0.05)

    out, out_scale = int_softmax_ibert(x, scaling_factor, output_bit=8)
    out = jax.block_until_ready(out)

    ref, ref_scale = _reference_jax(x, scaling_factor, output_bit=8)
    # Outputs are quantized to multiples of out_scale (= 1/128); allow one LSB
    # of slack for floor/round boundary flips caused by reduction-order deltas.
    np.testing.assert_allclose(np.asarray(out, dtype=np.float32),
                               np.asarray(ref, dtype=np.float32),
                               rtol=0, atol=float(out_scale) * 1.001)
    assert float(out_scale) == float(ref_scale)

    print("KERNEL_OK")
</pallas_src>

<mosaic_0001>
module attributes {stable_mosaic.version = 11 : i64} {
  func.func @_int_softmax_ibert_kernel(%arg0: i32, %arg1: memref<1xf32, #tpu.memory_space<smem>>, %arg2: memref<64x16xf32, #tpu.memory_space<vmem>>, %arg3: memref<64x16xf32, #tpu.memory_space<vmem>>) attributes {dimension_semantics = [#tpu.dimension_semantics<parallel>], iteration_bounds = array<i64: 2>, scalar_prefetch = 1 : i64, scratch_operands = 0 : i64, tpu.core_type = #tpu.core_type<tc>, window_params = [{transform_indices = @transform_0, window_bounds = array<i64: 64, 16>}, {transform_indices = @transform_1, window_bounds = array<i64: 64, 16>}]} {
    %c0 = arith.constant 0 : index
    %0 = memref.load %arg1[%c0] : memref<1xf32, #tpu.memory_space<smem>>
    %cst = arith.constant -6.931000e-01 : f32
    %1 = arith.divf %cst, %0 : f32
    %2 = math.floor %1 : f32
    %cst_0 = arith.constant 2.70732498 : f32
    %3 = arith.divf %cst_0, %0 : f32
    %4 = math.floor %3 : f32
    %5 = arith.mulf %0, %0 : f32
    %cst_1 = arith.constant 2.79211473 : f32
    %6 = arith.divf %cst_1, %5 : f32
    %7 = math.floor %6 : f32
    %8 = arith.mulf %0, %0 : f32
    %cst_2 = arith.constant 0.358151466 : f32
    %9 = arith.mulf %cst_2, %8 : f32
    %cst_3 = arith.constant 1.07374182E+9 : f32
    %10 = arith.divf %9, %cst_3 : f32
    %cst_4 = arith.constant 1.07374182E+9 : f32
    %11 = arith.mulf %7, %cst_4 : f32
    %cst_5 = arith.constant 1.1920929E-7 : f32
    %12 = arith.maximumf %11, %cst_5 : f32
    %cst_6 = arith.constant 3.276700e+04 : f32
    %13 = arith.divf %12, %cst_6 : f32
    %14 = arith.divf %13, %10 : f32
    %c0_7 = arith.constant 0 : index
    %c0_8 = arith.constant 0 : index
    %15 = vector.load %arg2[%c0_7, %c0_8] : memref<64x16xf32, #tpu.memory_space<vmem>>, vector<64x16xf32>
    %16 = vector.broadcast %0 : f32 to vector<64x16xf32>
    %17 = arith.divf %15, %16 : vector<64x16xf32>
    %cst_9 = arith.constant 0.000000e+00 : f32
    %18 = vector.broadcast %cst_9 : f32 to vector<64x16xf32>
    %19 = arith.cmpf olt, %17, %18 : vector<64x16xf32>
    %20 = math.ceil %17 : vector<64x16xf32>
    %21 = math.floor %17 : vector<64x16xf32>
    %22 = arith.select %19, %20, %21 : vector<64x16xi1>, vector<64x16xf32>
    %cst_10 = arith.constant dense<0xFF800000> : vector<64xf32>
    %23 = vector.multi_reduction <maximumf>, %22, %cst_10 [1] : vector<64x16xf32> to vector<64xf32>
    %24 = vector.shape_cast %23 : vector<64xf32> to vector<64x1xf32>
    %25 = vector.broadcast %24 : vector<64x1xf32> to vector<64x16xf32>
    %26 = arith.subf %22, %25 : vector<64x16xf32>
    %cst_11 = arith.constant 3.000000e+01 : f32
    %27 = arith.mulf %cst_11, %2 : f32
    %28 = vector.broadcast %27 : f32 to vector<64x16xf32>
    %29 = arith.maximumf %26, %28 : vector<64x16xf32>
    %30 = vector.broadcast %2 : f32 to vector<64x16xf32>
    %31 = arith.divf %29, %30 : vector<64x16xf32>
    %32 = math.floor %31 : vector<64x16xf32>
    %33 = vector.broadcast %2 : f32 to vector<64x16xf32>
    %34 = arith.mulf %33, %32 : vector<64x16xf32>
    %35 = arith.subf %29, %34 : vector<64x16xf32>
    %36 = vector.broadcast %4 : f32 to vector<64x16xf32>
    %37 = arith.addf %35, %36 : vector<64x16xf32>
    %38 = arith.mulf %35, %37 : vector<64x16xf32>
    %39 = vector.broadcast %7 : f32 to vector<64x16xf32>
    %40 = arith.addf %38, %39 : vector<64x16xf32>
    %cst_12 = arith.constant 3.000000e+01 : f32
    %41 = vector.broadcast %cst_12 : f32 to vector<64x16xf32>
    %42 = arith.subf %41, %32 : vector<64x16xf32>
    %43 = math.exp2 %42 : vector<64x16xf32>
    %44 = arith.mulf %40, %43 : vector<64x16xf32>
    %45 = math.floor %44 : vector<64x16xf32>
    %cst_13 = arith.constant 0.000000e+00 : f32
    %46 = vector.broadcast %cst_13 : f32 to vector<64x16xf32>
    %47 = arith.maximumf %45, %46 : vector<64x16xf32>
    %48 = vector.broadcast %10 : f32 to vector<64x16xf32>
    %49 = arith.divf %47, %48 : vector<64x16xf32>
    %50 = vector.broadcast %14 : f32 to vector<64x16xf32>
    %51 = arith.divf %49, %50 : vector<64x16xf32>
    %52 = math.roundeven %51 : vector<64x16xf32>
    %cst_14 = arith.constant 0.000000e+00 : f32
    %cst_15 = arith.constant 3.276700e+04 : f32
    %53 = arith.subf %cst_14, %cst_15 : f32
    %54 = vector.broadcast %53 : f32 to vector<64x16xf32>
    %55 = arith.maximumf %52, %54 : vector<64x16xf32>
    %cst_16 = arith.constant 3.276700e+04 : f32
    %56 = vector.broadcast %cst_16 : f32 to vector<64x16xf32>
    %57 = arith.minimumf %55, %56 : vector<64x16xf32>
    %58 = vector.broadcast %13 : f32 to vector<64x16xf32>
    %59 = arith.mulf %57, %58 : vector<64x16xf32>
    %60 = vector.broadcast %13 : f32 to vector<64x16xf32>
    %61 = arith.divf %59, %60 : vector<64x16xf32>
    %cst_17 = arith.constant dense<0.000000e+00> : vector<64xf32>
    %62 = vector.multi_reduction <add>, %61, %cst_17 [1] : vector<64x16xf32> to vector<64xf32>
    %63 = vector.shape_cast %62 : vector<64xf32> to vector<64x1xf32>
    %cst_18 = arith.constant 4.2949673E+9 : f32
    %64 = vector.broadcast %cst_18 : f32 to vector<64x1xf32>
    %65 = arith.divf %64, %63 : vector<64x1xf32>
    %66 = math.floor %65 : vector<64x1xf32>
    %67 = vector.broadcast %66 : vector<64x1xf32> to vector<64x16xf32>
    %68 = arith.mulf %61, %67 : vector<64x16xf32>
    %cst_19 = arith.constant 2.98023224E-8 : f32
    %69 = vector.broadcast %cst_19 : f32 to vector<64x16xf32>
    %70 = arith.mulf %68, %69 : vector<64x16xf32>
    %71 = math.floor %70 : vector<64x16xf32>
    %cst_20 = arith.constant 7.812500e-03 : f32
    %72 = vector.broadcast %cst_20 : f32 to vector<64x16xf32>
    %73 = arith.mulf %71, %72 : vector<64x16xf32>
    %c0_21 = arith.constant 0 : index
    %c0_22 = arith.constant 0 : index
    %74 = vector.load %arg3[%c0_21, %c0_22] : memref<64x16xf32, #tpu.memory_space<vmem>>, vector<64x16xf32>
    tpu.vector_store %arg3[%c0_21, %c0_22], %73 {strides = array<i32>} : memref<64x16xf32, #tpu.memory_space<vmem>>, vector<64x16xf32>,
    return
  }
  func.func @transform_0(%arg0: i32, %arg1: memref<1xf32, #tpu.memory_space<smem>>) -> (i32, i32) {
    %c0_i32 = arith.constant 0 : i32
    %c0_i32_0 = arith.constant 0 : i32
    return %arg0, %c0_i32 : i32, i32
  }
  func.func @transform_1(%arg0: i32, %arg1: memref<1xf32, #tpu.memory_space<smem>>) -> (i32, i32) {
    %c0_i32 = arith.constant 0 : i32
    %c0_i32_0 = arith.constant 0 : i32
    return %arg0, %c0_i32 : i32, i32
  }
}

</mosaic_0001>

<bundles_post_ra>
// kernel: tpu_custom_call.1
= control target key start
LH: loop header
LB: loop body
LE: loop exit
PB: predicated region body
PF: predicated region fallthrough
CT: control target
= control target key end

     0   :  { %s664_s11 = smov 0   ;;  %s878_s0 = inlined_call_operand.<no memory space> [shape: f32[1], index: 0, kind: input, shape index: {}]   ;;  %s879_s1 = inlined_call_operand.vmem [shape: f32[128,16], index: 1, kind: input, shape index: {}]   ;;  %s880_s2 = inlined_call_operand.vmem [shape: f32[128,16], index: 2, kind: output, shape index: {}]  }
   0x1   :  { %7 = sst [smem:[#allocation3]] %s878_s0 }
   0x2 LB: > { %s551_s12 = sadd.s32 4294967295, %s643_s11   ;;  %p555_p0 = scmp.ge.s32.totalorder %s643_s11, 1  ;;  %s643_s11 = sphi %s664_s11, %s13_s11  }
   0x3   : > { %p90_p1 = scmp.lt.s32.totalorder %s643_s11, 3 }
   0x5   : > { %p91_p2 = pnand %p555_p0, %p90_p1 }
   0x6   : > { %s556_s13 = sshll.u32 (!%p91_p2), %s551_s12, 3  ;;  %s122_s14 = sld [smem:[#allocation3]] (!%p91_p2)  ;;  %vm202_vm0 = vcmask (!%p91_p2), 130048  }
   0x7   : > { %94 = sbr.rel (%p91_p2) target bundleno = 396 (0x18c), region = 24  ;;  %p111_p3 = scmp.lt.s32.totalorder (!%p91_p2), %s556_s13, 15 }
   0x8   : > { %s645_s28 = smov (!%p91_p2), 1.1920929e-07  }
   0xc   : > { %v123_v0 = vstv (!%p91_p2), %s122_s14  ;;  %s133_s0 = smul.f32 (!%p91_p2), %s122_s14, %s122_s14 }
   0xd   : > { %593 = vrcp.f32 (!%p91_p2), %v123_v0 }
   0xe   : > { %s882_s13 = smov (!%p111_p3, %s556_s13), 15  ;;  %v134_v1 = vstv %s133_s0  ;;  %s139_s16 = smul.f32 0.35815147, %s133_s0 }
   0xf   : > { %s557_s15 = sshll.u32 %s882_s13, 3  ;;  %595 = vrcp.f32 %v134_v1 }
  0x10   : > { %s114_s19 = scalar_lea.vmem %s879_s1, %s557_s15  ;;  %s142_s20 = smul.f32 9.313226e-10, %s139_s16 }
  0x11   : > { %v154_v3 = vld [vmem:[%s114_s19 + $0x10] sm:$0xff]  ;;  %v152_v4 = vld [vmem:[%s114_s19] sm:$0xff]  ;;  %v155_v5 = vld [vmem:[%s114_s19 + $0x18] sm:$0xff]  ;;  %s851_s10 = scalar_lea.vmem %s880_s2, %s557_s15 }
  0x12   : > { %v148_v2 = vstv %s142_s20  ;;  %v153_v6 = vld [vmem:[%s114_s19 + $0x8] sm:$0xff]  ;;  %v156_v8 = vld [vmem:[%s114_s19 + $0x20] sm:$0xff]  ;;  %v159_v9 = vld [vmem:[%s114_s19 + $0x38] sm:$0xff] }
  0x13   : > { %597 = vrcp.f32 %v148_v2  ;;  %v157_v7 = vld [vmem:[%s114_s19 + $0x28] sm:$0xff]  ;;  %v158_v10 = vld [vmem:[%s114_s19 + $0x30] sm:$0xff] }
  0x17   : > { %v594_v11 = vpop.eup %593 }
  0x18   : > { %v164_v12 = vmul.f32 %v594_v11, %v154_v3  ;;  %v162_v13 = vmul.f32 %v594_v11, %v152_v4  ;;  %v165_v14 = vmul.f32 %v594_v11, %v155_v5  ;;  %v163_v15 = vmul.f32 %v594_v11, %v153_v6  ;;  %570 = vpush %v594_v11 }
  0x19   : > { %v167_v16 = vmul.f32 %v594_v11, %v157_v7  ;;  %v166_v17 = vmul.f32 %v594_v11, %v156_v8  ;;  %v169_v18 = vmul.f32 %v594_v11, %v159_v9  ;;  %v168_v19 = vmul.f32 %v594_v11, %v158_v10  ;;  %v596_v20 = vpop.eup %595 }
  0x1a   : > { %vm172_vm1 = vcmp.lt.f32.partialorder %v164_v12, 0.0  ;;  %v180_v21 = vceil.f32 %v164_v12  ;;  %v188_v22 = vfloor.f32 %v164_v12  ;;  %vm170_vm2 = vcmp.lt.f32.partialorder %v162_v13, 0.0  ;;  %572 = vpush %v596_v20 }
  0x1b   : > { %v178_v23 = vceil.f32 %v162_v13  ;;  %v186_v24 = vfloor.f32 %v162_v13  ;;  %vm173_vm3 = vcmp.lt.f32.partialorder %v165_v14, 0.0  ;;  %v181_v25 = vceil.f32 %v165_v14 }
  0x1c   : > { %v680_v26 = vsel %vm172_vm1, %v180_v21, %v188_v22  ;;  %v189_v27 = vfloor.f32 %v165_v14  ;;  %vm171_vm4 = vcmp.lt.f32.partialorder %v163_v15, 0.0  ;;  %v179_v28 = vceil.f32 %v163_v15 }
  0x1d   : > { %v209_v29 = vsel %vm202_vm0, %v680_v26, -inf  ;;  %v194_v30 = vsel %vm170_vm2, %v178_v23, %v186_v24  ;;  %v187_v31 = vfloor.f32 %v163_v15  ;;  %vm175_vm5 = vcmp.lt.f32.partialorder %v167_v16, 0.0  ;;  %v684_v32 = vpop.eup %597 }
  0x1e   : > { %210 = vmax.xlane.f32.xlu1 %v209_v29  ;;  %v203_v33 = vsel %vm202_vm0, %v194_v30, -inf  ;;  %v687_v34 = vsel %vm173_vm3, %v181_v25, %v189_v27  ;;  %v183_v35 = vceil.f32 %v167_v16  ;;  %v191_v36 = vfloor.f32 %v167_v16  ;;  %574 = vpush %v684_v32 }
  0x1f   : > { %204 = vmax.xlane.f32.xlu0 %v203_v33  ;;  %v212_v37 = vsel %vm202_vm0, %v687_v34, -inf  ;;  %v691_v38 = vsel %vm171_vm4, %v179_v28, %v187_v31  ;;  %vm174_vm6 = vcmp.lt.f32.partialorder %v166_v17, 0.0  ;;  %v182_v39 = vceil.f32 %v166_v17 }
  0x20   : > { %v206_v40 = vsel %vm202_vm0, %v691_v38, -inf  ;;  %v696_v41 = vsel %vm175_vm5, %v183_v35, %v191_v36  ;;  %v190_v42 = vfloor.f32 %v166_v17  ;;  %vm177_vm7 = vcmp.lt.f32.partialorder %v169_v18, 0.0 }
  0x21   : > { %v185_v43 = vceil.f32 %v169_v18  ;;  %v193_v44 = vfloor.f32 %v169_v18  ;;  %vm176_vm8 = vcmp.lt.f32.partialorder %v168_v19, 0.0  ;;  %v184_v46 = vceil.f32 %v168_v19 }
  0x22   : > { %213 = vmax.xlane.f32.xlu1 %v212_v37  ;;  %v698_v45 = vsel %vm174_vm6, %v182_v39, %v190_v42  ;;  %v192_v47 = vfloor.f32 %v168_v19  ;;  %v218_v48 = vsel %vm202_vm0, %v696_v41, -inf }
  0x23   : > { %207 = vmax.xlane.f32.xlu0 %v206_v40  ;;  %v215_v49 = vsel %vm202_vm0, %v698_v45, -inf  ;;  %v704_v50 = vsel %vm177_vm7, %v185_v43, %v193_v44 }
  0x24   : > { %v706_v51 = vsel %vm176_vm8, %v184_v46, %v192_v47  ;;  %v224_v52 = vsel %vm202_vm0, %v704_v50, -inf }
  0x25   : > { %v221_v53 = vsel %vm202_vm0, %v706_v51, -inf }
  0x26   : > { %219 = vmax.xlane.f32.xlu1 %v218_v48 }
  0x27   : > { %216 = vmax.xlane.f32.xlu0 %v215_v49 }
  0x2a   : > { %225 = vmax.xlane.f32.xlu1 %v224_v52 }
  0x2b   : > { %222 = vmax.xlane.f32.xlu0 %v221_v53 }
  0x49   : > { %s571_s21 = spop %570 }
  0x4a   : > { %s126_s23 = smul.f32 -0.6931, %s571_s21 }
  0x4b   : > { %s573_s22 = spop %572  ;;  %s131_s5 = smul.f32 2.707325, %s571_s21 }
  0x4c   : > { %s137_s24 = smul.f32 2.7921147, %s573_s22  ;;  %s127_s25 = sfloor.f32 %s126_s23 }
  0x4d   : > { %v712_v54 = vstv %s127_s25  ;;  %s235_s3 = smul.f32 30.0, %s127_s25  ;;  %s132_s7 = sfloor.f32 %s131_s5 }
  0x4e   : > { %s138_s26 = sfloor.f32 %s137_s24  ;;  %599 = vrcp.f32 %v712_v54  ;;  %v729_v6 = vstv %s132_s7 }
  0x4f   : > { %s143_s27 = smul.f32 1.0737418e+09, %s138_s26  ;;  %s575_s4 = spop %574  ;;  %v721_v59 = vstv %s235_s3  ;;  %v732_v9 = vstv %s138_s26 }
  0x51   : > { %s715_s29 = smax.f32 %s645_s28, %s143_s27 }
  0x52   : > { %s147_s30 = smul.f32 3.051851e-05, %s715_s29 }
  0x54   : > { %s151_s6 = smul.f32 %s575_s4, %s147_s30  ;;  %v735_v13 = vstv %s147_s30 }
  0x56   : > { %v355_v3 = vstv %s151_s6 }
  0x57   : > { %601 = vrcp.f32 %v355_v3 }
  0x58   : > { %v719_v58 = vpop.eup %599 }
  0x61   : > { %v754_v52 = vpop.eup %601 }
  0xab   : > { %v211_v55 = vpop.xlane.xlu1 %210 }
  0xac   : > { %v229_v56 = vsub.f32 %v680_v26, %v211_v55  ;;  %v205_v57 = vpop.xlane.xlu0 %204 }
  0xad   : > { %v227_v60 = vsub.f32 %v194_v30, %v205_v57 }
  0xae   : > { %v239_v61 = vmax.f32 %v229_v56, %v721_v59 }
  0xaf   : > { %v237_v62 = vmax.f32 %v227_v60, %v721_v59  ;;  %v214_v63 = vpop.xlane.xlu1 %213 }
  0xb0   : > { %v249_v0 = vmul.f32 %v719_v58, %v239_v61  ;;  %v230_v1 = vsub.f32 %v687_v34, %v214_v63  ;;  %v208_v2 = vpop.xlane.xlu0 %207 }
  0xb1   : > { %v247_v4 = vmul.f32 %v719_v58, %v237_v62  ;;  %v228_v5 = vsub.f32 %v691_v38, %v208_v2 }
  0xb2   : > { %v257_v7 = vfloor.f32 %v249_v0  ;;  %v240_v8 = vmax.f32 %v230_v1, %v721_v59 }
  0xb3   : > { %v255_v10 = vfloor.f32 %v247_v4  ;;  %v238_v11 = vmax.f32 %v228_v5, %v721_v59  ;;  %v220_v12 = vpop.xlane.xlu1 %219 }
  0xb4   : > { %v265_v14 = vmul.f32 %v257_v7, %v712_v54  ;;  %v307_v15 = vsub.f32 30.0, %v257_v7  ;;  %v250_v16 = vmul.f32 %v719_v58, %v240_v8  ;;  %v232_v17 = vsub.f32 %v696_v41, %v220_v12  ;;  %v217_v18 = vpop.xlane.xlu0 %216 }
  0xb5   : > { %v263_v19 = vmul.f32 %v255_v10, %v712_v54  ;;  %v305_v20 = vsub.f32 30.0, %v255_v10  ;;  %v248_v21 = vmul.f32 %v719_v58, %v238_v11  ;;  %v231_v22 = vsub.f32 %v698_v45, %v217_v18 }
  0xb6   : > { %v273_v23 = vsub.f32 %v239_v61, %v265_v14  ;;  %603 = vpow2.f32 %v307_v15  ;;  %v258_v24 = vfloor.f32 %v250_v16  ;;  %v242_v25 = vmax.f32 %v232_v17, %v721_v59 }
  0xb7   : > { %v271_v26 = vsub.f32 %v237_v62, %v263_v19  ;;  %605 = vpow2.f32 %v305_v20  ;;  %v256_v27 = vfloor.f32 %v248_v21  ;;  %v241_v28 = vmax.f32 %v231_v22, %v721_v59  ;;  %v226_v38 = vpop.xlane.xlu1 %225 }
  0xb8   : > { %v282_v29 = vadd.f32 %v729_v6, %v273_v23  ;;  %v266_v30 = vmul.f32 %v258_v24, %v712_v54  ;;  %v308_v31 = vsub.f32 30.0, %v258_v24  ;;  %v252_v33 = vmul.f32 %v719_v58, %v242_v25  ;;  %v223_v42 = vpop.xlane.xlu0 %222 }
  0xb9   : > { %v280_v34 = vadd.f32 %v729_v6, %v271_v26  ;;  %v264_v35 = vmul.f32 %v256_v27, %v712_v54  ;;  %v306_v36 = vsub.f32 30.0, %v256_v27  ;;  %v251_v37 = vmul.f32 %v719_v58, %v241_v28 }
  0xba   : > { %v290_v39 = vmul.f32 %v282_v29, %v273_v23  ;;  %v274_v40 = vsub.f32 %v240_v8, %v266_v30  ;;  %607 = vpow2.f32 %v308_v31  ;;  %v260_v41 = vfloor.f32 %v252_v33 }
  0xbb   : > { %v288_v43 = vmul.f32 %v280_v34, %v271_v26  ;;  %v272_v44 = vsub.f32 %v238_v11, %v264_v35  ;;  %609 = vpow2.f32 %v306_v36  ;;  %v259_v45 = vfloor.f32 %v251_v37 }
  0xbc   : > { %v283_v46 = vadd.f32 %v729_v6, %v274_v40  ;;  %v268_v47 = vmul.f32 %v260_v41, %v712_v54  ;;  %v310_v48 = vsub.f32 30.0, %v260_v41  ;;  %v234_v49 = vsub.f32 %v704_v50, %v226_v38 }
  0xbd   : > { %v281_v53 = vadd.f32 %v729_v6, %v272_v44  ;;  %v267_v55 = vmul.f32 %v259_v45, %v712_v54  ;;  %v309_v56 = vsub.f32 30.0, %v259_v45  ;;  %v233_v57 = vsub.f32 %v706_v51, %v223_v42 }
  0xbe   : > { %v291_v60 = vmul.f32 %v283_v46, %v274_v40  ;;  %v276_v61 = vsub.f32 %v242_v25, %v268_v47  ;;  %611 = vpow2.f32 %v310_v48  ;;  %v244_v62 = vmax.f32 %v234_v49, %v721_v59 }
  0xbf   : > { %v289_v63 = vmul.f32 %v281_v53, %v272_v44  ;;  %v275_v0 = vsub.f32 %v241_v28, %v267_v55  ;;  %613 = vpow2.f32 %v309_v56  ;;  %v243_v1 = vmax.f32 %v233_v57, %v721_v59 }
  0xc0   : > { %v604_v50 = vpop.eup %603  ;;  %v285_v2 = vadd.f32 %v729_v6, %v276_v61  ;;  %v254_v3 = vmul.f32 %v719_v58, %v244_v62  ;;  %v297_v4 = vadd.f32 %v732_v9, %v288_v43  ;;  %v299_v5 = vadd.f32 %v732_v9, %v290_v39 }
  0xc1   : > { %v606_v51 = vpop.eup %605  ;;  %v284_v7 = vadd.f32 %v729_v6, %v275_v0  ;;  %v253_v8 = vmul.f32 %v719_v58, %v243_v1  ;;  %615 = vrcp.f32 %v735_v13  ;;  %v298_v59 = vadd.f32 %v732_v9, %v289_v63 }
  0xc2   : > { %v293_v10 = vmul.f32 %v285_v2, %v276_v61  ;;  %v262_v11 = vfloor.f32 %v254_v3  ;;  %v321_v12 = vmul.f32 %v606_v51, %v297_v4  ;;  %v323_v14 = vmul.f32 %v604_v50, %v299_v5 }
  0xc3   : > { %v261_v15 = vfloor.f32 %v253_v8  ;;  %v300_v16 = vadd.f32 %v732_v9, %v291_v60  ;;  %v292_v18 = vmul.f32 %v284_v7, %v275_v0 }
  0xc4   : > { %v608_v17 = vpop.eup %607  ;;  %v270_v19 = vmul.f32 %v262_v11, %v712_v54  ;;  %v312_v20 = vsub.f32 30.0, %v262_v11  ;;  %v329_v21 = vfloor.f32 %v321_v12  ;;  %v302_v58 = vadd.f32 %v732_v9, %v293_v10 }
  0xc5   : > { %v610_v22 = vpop.eup %609  ;;  %v269_v23 = vmul.f32 %v261_v15, %v712_v54  ;;  %v311_v24 = vsub.f32 30.0, %v261_v15  ;;  %v331_v25 = vfloor.f32 %v323_v14  ;;  %v324_v31 = vmul.f32 %v608_v17, %v300_v16 }
  0xc6   : > { %v278_v26 = vsub.f32 %v244_v62, %v270_v19  ;;  %617 = vpow2.f32 %v312_v20  ;;  %v337_v27 = vmax.f32 %v329_v21, 0.0  ;;  %v322_v28 = vmul.f32 %v610_v22, %v298_v59 }
  0xc7   : > { %v277_v29 = vsub.f32 %v243_v1, %v269_v23  ;;  %619 = vpow2.f32 %v311_v24  ;;  %v339_v30 = vmax.f32 %v331_v25, 0.0  ;;  %v301_v34 = vadd.f32 %v732_v9, %v292_v18 }
  0xc8   : > { %v612_v33 = vpop.eup %611  ;;  %v287_v35 = vadd.f32 %v729_v6, %v278_v26  ;;  %v347_v36 = vmul.f32 %v684_v32, %v337_v27  ;;  %v330_v37 = vfloor.f32 %v322_v28  ;;  %v332_v41 = vfloor.f32 %v324_v31 }
  0xc9   : > { %v614_v38 = vpop.eup %613  ;;  %v326_v54 = vmul.f32 %v612_v33, %v302_v58  ;;  %v286_v39 = vadd.f32 %v729_v6, %v277_v29  ;;  %v349_v40 = vmul.f32 %v684_v32, %v339_v30 }
  0xca   : > { %v325_v42 = vmul.f32 %v614_v38, %v301_v34  ;;  %v357_v43 = vmul.f32 %v754_v52, %v347_v36  ;;  %v338_v44 = vmax.f32 %v330_v37, 0.0  ;;  %v295_v46 = vmul.f32 %v287_v35, %v278_v26 }
  0xcb   : > { %v334_v45 = vfloor.f32 %v326_v54  ;;  %v359_v47 = vmul.f32 %v754_v52, %v349_v40  ;;  %v340_v48 = vmax.f32 %v332_v41, 0.0  ;;  %v294_v53 = vmul.f32 %v286_v39, %v277_v29  ;;  %v781_v57 = vpop.eup %615 }
  0xcc   : > { %v333_v49 = vfloor.f32 %v325_v42  ;;  %v576_v55 = vround.rtne.f32 %v357_v43  ;;  %v348_v56 = vmul.f32 %v684_v32, %v338_v44  ;;  %v304_v1 = vadd.f32 %v732_v9, %v295_v46 }
  0xcd   : > { %v578_v6 = vround.rtne.f32 %v359_v47  ;;  %v350_v60 = vmul.f32 %v684_v32, %v340_v48  ;;  %v342_v61 = vmax.f32 %v334_v45, 0.0  ;;  %v303_v5 = vadd.f32 %v732_v9, %v294_v53 }
  0xce   : > { %v560_v62 = vclamps-f32 %v576_v55, 32767.0  ;;  %v358_v63 = vmul.f32 %v754_v52, %v348_v56  ;;  %v341_v0 = vmax.f32 %v333_v49, 0.0 }
  0xcf   : > { %v562_v50 = vclamps-f32 %v578_v6, 32767.0  ;;  %v360_v2 = vmul.f32 %v754_v52, %v350_v60  ;;  %v352_v3 = vmul.f32 %v684_v32, %v342_v61 }
  0xd0   : > { %v618_v4 = vpop.eup %617  ;;  %v390_v51 = vmul.f32 %v560_v62, %v735_v13  ;;  %v577_v7 = vround.rtne.f32 %v358_v63  ;;  %v351_v8 = vmul.f32 %v684_v32, %v341_v0 }
  0xd1   : > { %v620_v10 = vpop.eup %619  ;;  %v328_v11 = vmul.f32 %v618_v4, %v304_v1  ;;  %v392_v12 = vmul.f32 %v562_v50, %v735_v13  ;;  %v579_v14 = vround.rtne.f32 %v360_v2  ;;  %v362_v15 = vmul.f32 %v754_v52, %v352_v3 }
  0xd2   : > { %v327_v59 = vmul.f32 %v620_v10, %v303_v5  ;;  %v794_v16 = vmul.f32 %v781_v57, %v390_v51  ;;  %v561_v17 = vclamps-f32 %v577_v7, 32767.0  ;;  %v361_v18 = vmul.f32 %v754_v52, %v351_v8 }
  0xd3   : > { %v336_v9 = vfloor.f32 %v328_v11  ;;  %v798_v19 = vmul.f32 %v781_v57, %v392_v12  ;;  %v563_v20 = vclamps-f32 %v579_v14, 32767.0  ;;  %v581_v21 = vround.rtne.f32 %v362_v15 }
  0xd4   : > { %v335_v22 = vfloor.f32 %v327_v59  ;;  %v407_v58 = vsel %vm202_vm0, %v794_v16, 0.0  ;;  %v391_v23 = vmul.f32 %v561_v17, %v735_v13  ;;  %v580_v24 = vround.rtne.f32 %v361_v18 }
  0xd5   : > { %408 = vadd.xlane.f32.xlu0 %v407_v58  ;;  %v393_v25 = vmul.f32 %v563_v20, %v735_v13  ;;  %v565_v26 = vclamps-f32 %v581_v21, 32767.0  ;;  %v344_v27 = vmax.f32 %v336_v9, 0.0  ;;  %v413_v31 = vsel %vm202_vm0, %v798_v19, 0.0 }
  0xd6   : > { %v805_v28 = vmul.f32 %v781_v57, %v391_v23  ;;  %v564_v29 = vclamps-f32 %v580_v24, 32767.0  ;;  %v343_v30 = vmax.f32 %v335_v22, 0.0 }
  0xd7   : > { %v810_v33 = vmul.f32 %v781_v57, %v393_v25  ;;  %v354_v34 = vmul.f32 %v684_v32, %v344_v27  ;;  %v395_v37 = vmul.f32 %v565_v26, %v735_v13 }
  0xd8   : > { %v410_v35 = vsel %vm202_vm0, %v805_v28, 0.0  ;;  %v394_v36 = vmul.f32 %v564_v29, %v735_v13  ;;  %v353_v38 = vmul.f32 %v684_v32, %v343_v30 }
  0xd9   : > { %414 = vadd.xlane.f32.xlu0 %v413_v31  ;;  %411 = vadd.xlane.f32.xlu1 %v410_v35  ;;  %v364_v54 = vmul.f32 %v754_v52, %v354_v34  ;;  %v416_v42 = vsel %vm202_vm0, %v810_v33, 0.0  ;;  %v828_v44 = vmul.f32 %v781_v57, %v395_v37 }
  0xda   : > { %v820_v39 = vmul.f32 %v781_v57, %v394_v36  ;;  %v363_v40 = vmul.f32 %v754_v52, %v353_v38 }
  0xdb   : > { %v583_v41 = vround.rtne.f32 %v364_v54  ;;  %v422_v52 = vsel %vm202_vm0, %v828_v44, 0.0 }
  0xdc   : > { %v419_v43 = vsel %vm202_vm0, %v820_v39, 0.0  ;;  %v582_v32 = vround.rtne.f32 %v363_v40 }
  0xdd   : > { %417 = vadd.xlane.f32.xlu1 %v416_v42  ;;  %420 = vadd.xlane.f32.xlu0 %v419_v43  ;;  %v567_v45 = vclamps-f32 %v583_v41, 32767.0 }
  0xde   : > { %v566_v46 = vclamps-f32 %v582_v32, 32767.0 }
  0xdf   : > { %v397_v47 = vmul.f32 %v567_v45, %v735_v13 }
  0xe0   : > { %v396_v48 = vmul.f32 %v566_v46, %v735_v13 }
  0xe1   : > { %423 = vadd.xlane.f32.xlu1 %v422_v52  ;;  %v835_v49 = vmul.f32 %v781_v57, %v397_v47 }
  0xe2   : > { %v838_v53 = vmul.f32 %v781_v57, %v396_v48 }
  0xe3   : > { %v428_v56 = vsel %vm202_vm0, %v835_v49, 0.0 }
  0xe4   : > { %v425_v55 = vsel %vm202_vm0, %v838_v53, 0.0 }
  0xe5   : > { %426 = vadd.xlane.f32.xlu0 %v425_v55  ;;  %429 = vadd.xlane.f32.xlu1 %v428_v56 }
 0x162   : > { %v409_v6 = vpop.xlane.xlu0 %408 }
 0x163   : > { %621 = vrcp.f32 %v409_v6 }
 0x166   : > { %v412_v60 = vpop.xlane.xlu1 %411  ;;  %v415_v61 = vpop.xlane.xlu0 %414 }
 0x167   : > { %623 = vrcp.f32 %v412_v60 }
 0x168   : > { %625 = vrcp.f32 %v415_v61 }
 0x16a   : > { %v418_v13 = vpop.xlane.xlu1 %417  ;;  %v421_v62 = vpop.xlane.xlu0 %420 }
 0x16b   : > { %627 = vrcp.f32 %v418_v13 }
 0x16c   : > { %629 = vrcp.f32 %v421_v62 }
 0x16d   : > { %v622_v57 = vpop.eup %621 }
 0x16e   : > { %v432_v63 = vmul.f32 4.2949673e+09, %v622_v57  ;;  %v424_v0 = vpop.xlane.xlu1 %423 }
 0x16f   : > { %631 = vrcp.f32 %v424_v0 }
 0x170   : > { %v447_v1 = vfloor.f32 %v432_v63 }
 0x171   : > { %v624_v50 = vpop.eup %623 }
 0x172   : > { %v626_v2 = vpop.eup %625  ;;  %v455_v3 = vmul.f32 %v447_v1, %v794_v16  ;;  %v434_v4 = vmul.f32 4.2949673e+09, %v624_v50  ;;  %v427_v5 = vpop.xlane.xlu0 %426 }
 0x173   : > { %v430_v51 = vpop.xlane.xlu1 %429  ;;  %v436_v7 = vmul.f32 4.2949673e+09, %v626_v2  ;;  %633 = vrcp.f32 %v427_v5 }
 0x174   : > { %v463_v8 = vmul.f32 2.9802322e-08, %v455_v3  ;;  %v448_v10 = vfloor.f32 %v434_v4  ;;  %635 = vrcp.f32 %v430_v51 }
 0x175   : > { %v628_v11 = vpop.eup %627  ;;  %v449_v12 = vfloor.f32 %v436_v7 }
 0x176   : > { %v630_v14 = vpop.eup %629  ;;  %v471_v15 = vfloor.f32 %v463_v8  ;;  %v456_v59 = vmul.f32 %v448_v10, %v805_v28  ;;  %v438_v17 = vmul.f32 4.2949673e+09, %v628_v11 }
 0x177   : > { %v457_v16 = vmul.f32 %v449_v12, %v798_v19  ;;  %v440_v18 = vmul.f32 4.2949673e+09, %v630_v14 }
 0x178   : > { %v479_v9 = vmul.f32 0.0078125, %v471_v15  ;;  %v464_v20 = vmul.f32 2.9802322e-08, %v456_v59  ;;  %v450_v21 = vfloor.f32 %v438_v17 }
 0x179   : > { %v632_v22 = vpop.eup %631  ;;  %v465_v58 = vmul.f32 2.9802322e-08, %v457_v16  ;;  %v451_v23 = vfloor.f32 %v440_v18 }
 0x17a   : > { %487 = vst.msk [vmem:[%s851_s10] sm:$0xff] %vm202_vm0, %v479_v9  ;;  %v472_v24 = vfloor.f32 %v464_v20  ;;  %v458_v25 = vmul.f32 %v450_v21, %v810_v33  ;;  %v442_v26 = vmul.f32 4.2949673e+09, %v632_v22 }
 0x17b   : > { %v473_v27 = vfloor.f32 %v465_v58  ;;  %v459_v28 = vmul.f32 %v451_v23, %v820_v39 }
 0x17c   : > { %v480_v29 = vmul.f32 0.0078125, %v472_v24  ;;  %v466_v19 = vmul.f32 2.9802322e-08, %v458_v25  ;;  %v452_v30 = vfloor.f32 %v442_v26 }
 0x17d   : > { %v634_v31 = vpop.eup %633  ;;  %v481_v34 = vmul.f32 0.0078125, %v473_v27  ;;  %v467_v35 = vmul.f32 2.9802322e-08, %v459_v28 }
 0x17e   : > { %v636_v36 = vpop.eup %635  ;;  %488 = vst.msk [vmem:[%s851_s10 + $0x8] sm:$0xff] %vm202_vm0, %v480_v29  ;;  %v474_v37 = vfloor.f32 %v466_v19  ;;  %v460_v38 = vmul.f32 %v452_v30, %v828_v44  ;;  %v444_v54 = vmul.f32 4.2949673e+09, %v634_v31 }
 0x17f   : > { %489 = vst.msk [vmem:[%s851_s10 + $0x10] sm:$0xff] %vm202_vm0, %v481_v34  ;;  %v475_v33 = vfloor.f32 %v467_v35  ;;  %v446_v39 = vmul.f32 4.2949673e+09, %v636_v36 }
 0x180   : > { %v482_v40 = vmul.f32 0.0078125, %v474_v37  ;;  %v468_v41 = vmul.f32 2.9802322e-08, %v460_v38  ;;  %v453_v42 = vfloor.f32 %v444_v54 }
 0x181   : > { %v483_v43 = vmul.f32 0.0078125, %v475_v33  ;;  %v454_v32 = vfloor.f32 %v446_v39 }
 0x182   : > { %490 = vst.msk [vmem:[%s851_s10 + $0x18] sm:$0xff] %vm202_vm0, %v482_v40  ;;  %v476_v45 = vfloor.f32 %v468_v41  ;;  %v461_v46 = vmul.f32 %v453_v42, %v838_v53 }
 0x183   : > { %491 = vst.msk [vmem:[%s851_s10 + $0x20] sm:$0xff] %vm202_vm0, %v483_v43  ;;  %v462_v44 = vmul.f32 %v454_v32, %v835_v49 }
 0x184   : > { %v484_v47 = vmul.f32 0.0078125, %v476_v45  ;;  %v469_v52 = vmul.f32 2.9802322e-08, %v461_v46 }
 0x185   : > { %v470_v48 = vmul.f32 2.9802322e-08, %v462_v44 }
 0x186   : > { %492 = vst.msk [vmem:[%s851_s10 + $0x28] sm:$0xff] %vm202_vm0, %v484_v47  ;;  %v477_v55 = vfloor.f32 %v469_v52 }
 0x187   : > { %v478_v56 = vfloor.f32 %v470_v48 }
 0x188   : > { %v485_v6 = vmul.f32 0.0078125, %v477_v55 }
 0x189   : > { %v486_v60 = vmul.f32 0.0078125, %v478_v56 }
 0x18a   : > { %493 = vst.msk [vmem:[%s851_s10 + $0x30] sm:$0xff] %vm202_vm0, %v485_v6 }
 0x18b   : > { %494 = vst.msk [vmem:[%s851_s10 + $0x38] sm:$0xff] %vm202_vm0, %v486_v60 }
 0x18c PF: > { %s13_s11 = sadd.s32 1, %s643_s11  }
 0x18d   : > { %p10_p4 = scmp.ge.s32.totalorder %s13_s11, 4  }
 0x18f   :  { %12 = sbr.rel (!%p10_p4) target bundleno = 2 (0x2), region = 54 }

</bundles_post_ra>
